<compile_context>
chip_gen: v6e
topology: v6e:2x2x1
jax: 0.10.0
libtpu: 0.0.40
codegen_flags: <defaults>
</compile_context>

<pallas_src>
import jax
import jax.numpy as jnp
from jax.experimental import pallas as pl
from jax.experimental.pallas import tpu as pltpu


def _pad_up(v, m):
    return -(-v // m) * m


def _pick_tile(dim, candidates):
    """Largest candidate that evenly divides `dim`; falls back to the full dim."""
    for c in candidates:
        if c <= dim and dim % c == 0:
            return c
    return dim


def _can_halve(blk, full):
    h = blk // 2
    return blk % 2 == 0 and h >= 8 and h % 8 == 0 and full % h == 0


def _make_kernel(block_s, s_tiles_per_part, basis_resident):
    """Build the grid-step kernel.

    x_ref:     (block_b, block_s, D_f)          VMEM tile of (folded) x
    basis_ref: (S_f, D_f) if basis_resident     whole-resident basis
               (block_s, D_f) otherwise         per-step basis chunk
    o_ref:     (1, block_b, D_f)                output tile (resident over S axis)
    acc_ref:   (block_b, D_f) f32               VMEM scratch accumulator
    """

    def kernel(x_ref, basis_ref, o_ref, acc_ref):
        k = pl.program_id(2)

        @pl.when(k == 0)
        def _init():
            acc_ref[...] = jnp.zeros_like(acc_ref)

        if basis_resident:
            # Whole-resident basis: slice the current context chunk in VMEM.
            k_glob = pl.program_id(0) * s_tiles_per_part + k
            start = pl.multiple_of(k_glob * block_s, block_s)
            b = basis_ref[pl.ds(start, block_s), :]
        else:
            b = basis_ref[...]

        x = x_ref[...]
        # Multiply in the input dtype (lane-dense on the VPU), upcast only for
        # the accumulate (no-op for f32 inputs); sublane reduce on the XLU.
        prod = (x * b[None, :, :]).astype(jnp.float32)
        acc_ref[...] += jnp.sum(prod, axis=1)

        @pl.when(k == pl.num_programs(2) - 1)
        def _finalize():
            o_ref[0] = acc_ref[...].astype(o_ref.dtype)

    return kernel


def efficient_fractal_compress(x, basis):
    """Pallas forward of EfficientFractalCompress: einsum('bsd,sd->bd', x, basis)."""
    B, S, D = x.shape
    S2, D2 = basis.shape
    assert (S, D) == (S2, D2), f"basis shape {basis.shape} incompatible with x {x.shape}"

    # --- lane fold: make the last (lane) dim a full multiple of 128 ----------
    fold = 1
    if D % 128 != 0 and 128 % D == 0:
        f = 128 // D
        if S % f == 0:
            fold = f
    S_f, D_f = S // fold, D * fold
    x_f = x.reshape(B, S_f, D_f)            # free row-major reshape
    basis_f = basis.reshape(S_f, D_f)

    itemsize = x.dtype.itemsize
    lane_pad = _pad_up(D_f, 128)

    # --- VMEM budgets derived from the actual chip ----------------------------
    try:
        vmem_cap = int(pltpu.get_tpu_info().vmem_capacity_bytes)
    except Exception:
        vmem_cap = 64 * 1024 * 1024          # conservative (v7x-sized) fallback
    vmem_limit = min(int(vmem_cap * 0.70), 96 * 1024 * 1024)
    x_tile_budget = min(vmem_limit // 4, 16 * 1024 * 1024)  # per x buffer (x is double-buffered)

    def x_tile_bytes(bb, bs):
        # padded (8,128) layout bytes of one x tile buffer
        return bb * _pad_up(bs, 8) * lane_pad * itemsize

    block_s = _pick_tile(S_f, (1024, 512, 256, 128, 64, 32, 16, 8))
    block_b = _pick_tile(B, (256, 128, 64, 32, 16, 8))

    # Shrink block_s first and keep block_b as large as possible: basis HBM
    # re-reads scale with B/block_b, while block_s only needs ~>=128 rows.
    while block_s > 128 and _can_halve(block_s, S_f) and \
            x_tile_bytes(block_b, block_s) > x_tile_budget:
        block_s //= 2
    while block_b > 8 and _can_halve(block_b, B) and \
            x_tile_bytes(block_b, block_s) > x_tile_budget:
        block_b //= 2

    n_b_tiles = B // block_b

    # Small batch (single batch tile): guarantee >= 2 context tiles so the
    # leading "parallel" partition axis can occupy both TensorCores on v7x.
    if n_b_tiles == 1 and (S_f // block_s) < 2 and _can_halve(block_s, S_f):
        block_s //= 2

    n_s_tiles = S_f // block_s
    num_parts = 2 if (n_b_tiles == 1 and n_s_tiles >= 2 and n_s_tiles % 2 == 0) else 1
    s_tiles_per_part = n_s_tiles // num_parts

    # Whole-resident basis when small: constant block index -> single HBM fetch.
    basis_bytes = _pad_up(S_f, 8) * lane_pad * basis.dtype.itemsize
    basis_resident = basis_bytes <= 4 * 1024 * 1024

    x_spec = pl.BlockSpec(
        (block_b, block_s, D_f),
        lambda p, i, k: (i, p * s_tiles_per_part + k, 0))
    if basis_resident:
        basis_spec = pl.BlockSpec((S_f, D_f), lambda p, i, k: (0, 0))
    else:
        basis_spec = pl.BlockSpec(
            (block_s, D_f),
            lambda p, i, k: (p * s_tiles_per_part + k, 0))
    out_spec = pl.BlockSpec((1, block_b, D_f), lambda p, i, k: (p, i, 0))

    basis_reads = 1 if basis_resident else num_parts * n_b_tiles
    cost = pl.CostEstimate(
        flops=2 * B * S * D,
        transcendentals=0,
        bytes_accessed=(x.size * itemsize
                        + basis_reads * basis.size * basis.dtype.itemsize
                        + num_parts * B * D_f * itemsize))

    kernel = _make_kernel(block_s, s_tiles_per_part, basis_resident)

    partials = pl.pallas_call(
        kernel,
        out_shape=jax.ShapeDtypeStruct((num_parts, B, D_f), x.dtype),
        grid_spec=pltpu.PrefetchScalarGridSpec(
            num_scalar_prefetch=0,
            grid=(num_parts, n_b_tiles, s_tiles_per_part),
            in_specs=[x_spec, basis_spec],
            out_specs=out_spec,
            scratch_shapes=[pltpu.VMEM((block_b, D_f), jnp.float32)],
        ),
        compiler_params=pltpu.CompilerParams(
            # partition and batch tiles are independent (megacore-shardable);
            # the S axis is the reduction -> last, "arbitrary".
            dimension_semantics=("parallel", "parallel", "arbitrary"),
            vmem_limit_bytes=vmem_limit,
        ),
        cost_estimate=cost,
    )(x_f, basis_f)

    out_f = partials[0] if num_parts == 1 else jnp.sum(partials, axis=0)   # (B, D_f)
    if fold > 1:
        out_f = out_f.reshape(B, fold, D).sum(axis=1)                      # un-fold lanes
    return out_f


def init_params(key, context_size=512, latent_dim=64):
    """Matches EfficientFractalCompress.__init__: basis = randn(context_size, latent_dim)."""
    return {"basis": jax.random.normal(key, (context_size, latent_dim), jnp.float32)}


if __name__ == "__main__":
    # Module defaults: context_size=512, latent_dim=64; small batch.
    B, S, D = 2, 512, 64

    root = jax.random.PRNGKey(0)
    k_param, k_x = jax.random.split(root)

    params = init_params(k_param, context_size=S, latent_dim=D)
    x = jax.random.normal(k_x, (B, S, D), jnp.float32)

    out = efficient_fractal_compress(x, params["basis"])
    jax.block_until_ready(out)

    # Reference check against the plain einsum the PyTorch module computes.
    ref = jnp.einsum("bsd,sd->bd", x, params["basis"])
    assert out.shape == (B, D)
    assert out.dtype == x.dtype
    err = float(jnp.max(jnp.abs(out - ref)))
    assert jnp.allclose(out, ref, atol=1e-3, rtol=1e-3), err
    print("KERNEL_OK")
</pallas_src>

<mosaic_0001>
module attributes {stable_mosaic.version = 11 : i64} {
  func.func @kernel(%arg0: i32, %arg1: i32, %arg2: i32, %arg3: memref<2x128x128xf32, #tpu.memory_space<vmem>>, %arg4: memref<256x128xf32, #tpu.memory_space<vmem>>, %arg5: memref<1x2x128xf32, #tpu.memory_space<vmem>>, %arg6: memref<2x128xf32, #tpu.memory_space<vmem>>) attributes {dimension_semantics = [#tpu.dimension_semantics<parallel>, #tpu.dimension_semantics<parallel>, #tpu.dimension_semantics<arbitrary>], iteration_bounds = array<i64: 2, 1, 1>, scalar_prefetch = 0 : i64, scratch_operands = 1 : i64, tpu.core_type = #tpu.core_type<tc>, window_params = [{transform_indices = @transform_0, window_bounds = array<i64: 2, 128, 128>}, {pipeline_mode = #tpu.pipeline_mode<synchronous>, transform_indices = @transform_1, window_bounds = array<i64: 256, 128>}, {transform_indices = @transform_2, window_bounds = array<i64: 1, 2, 128>}]} {
    %c0_i32 = arith.constant 0 : i32
    %0 = arith.cmpi eq, %arg2, %c0_i32 : i32
    %1 = arith.extui %0 : i1 to i32
    %c0_i32_0 = arith.constant 0 : i32
    %2 = arith.cmpi ne, %1, %c0_i32_0 : i32
    scf.if %2 {
      %cst_10 = arith.constant 0.000000e+00 : f32
      %20 = vector.broadcast %cst_10 : f32 to vector<2x128xf32>
      %c0_11 = arith.constant 0 : index
      %c0_12 = arith.constant 0 : index
      %21 = vector.load %arg6[%c0_11, %c0_12] : memref<2x128xf32, #tpu.memory_space<vmem>>, vector<2x128xf32>
      tpu.vector_store %arg6[%c0_11, %c0_12], %20 {strides = array<i32>} : memref<2x128xf32, #tpu.memory_space<vmem>>, vector<2x128xf32>,
    } else {
    }
    %c1_i32 = arith.constant 1 : i32
    %3 = arith.muli %arg0, %c1_i32 : i32
    %4 = arith.addi %3, %arg2 : i32
    %c128_i32 = arith.constant 128 : i32
    %5 = arith.muli %4, %c128_i32 : i32
    %6 = tpu.assume_multiple %5, 128 : i32
    %7 = arith.index_cast %6 : i32 to index
    %c0 = arith.constant 0 : index
    %8 = vector.load %arg4[%7, %c0] : memref<256x128xf32, #tpu.memory_space<vmem>>, vector<128x128xf32>
    %c0_1 = arith.constant 0 : index
    %c0_2 = arith.constant 0 : index
    %c0_3 = arith.constant 0 : index
    %9 = vector.load %arg3[%c0_1, %c0_2, %c0_3] : memref<2x128x128xf32, #tpu.memory_space<vmem>>, vector<2x128x128xf32>
    %10 = vector.shape_cast %8 : vector<128x128xf32> to vector<1x128x128xf32>
    %11 = vector.broadcast %10 : vector<1x128x128xf32> to vector<2x128x128xf32>
    %12 = arith.mulf %9, %11 : vector<2x128x128xf32>
    %c0_4 = arith.constant 0 : index
    %c0_5 = arith.constant 0 : index
    %13 = vector.load %arg6[%c0_4, %c0_5] : memref<2x128xf32, #tpu.memory_space<vmem>>, vector<2x128xf32>
    %cst = arith.constant dense<0.000000e+00> : vector<2x128xf32>
    %14 = vector.multi_reduction <add>, %12, %cst [1] : vector<2x128x128xf32> to vector<2x128xf32>
    %15 = arith.addf %13, %14 : vector<2x128xf32>
    %c0_6 = arith.constant 0 : index
    %c0_7 = arith.constant 0 : index
    %16 = vector.load %arg6[%c0_6, %c0_7] : memref<2x128xf32, #tpu.memory_space<vmem>>, vector<2x128xf32>
    tpu.vector_store %arg6[%c0_6, %c0_7], %15 {strides = array<i32>} : memref<2x128xf32, #tpu.memory_space<vmem>>, vector<2x128xf32>,
    %c0_i32_8 = arith.constant 0 : i32
    %17 = arith.cmpi eq, %arg2, %c0_i32_8 : i32
    %18 = arith.extui %17 : i1 to i32
    %c0_i32_9 = arith.constant 0 : i32
    %19 = arith.cmpi ne, %18, %c0_i32_9 : i32
    scf.if %19 {
      %c0_10 = arith.constant 0 : index
      %c0_11 = arith.constant 0 : index
      %20 = vector.load %arg6[%c0_10, %c0_11] : memref<2x128xf32, #tpu.memory_space<vmem>>, vector<2x128xf32>
      %c0_12 = arith.constant 0 : index
      %c0_13 = arith.constant 0 : index
      %c0_14 = arith.constant 0 : index
      %21 = vector.load %arg5[%c0_12, %c0_13, %c0_14] : memref<1x2x128xf32, #tpu.memory_space<vmem>>, vector<1x2x128xf32>
      %22 = vector.shape_cast %21 : vector<1x2x128xf32> to vector<2x128xf32>
      %23 = vector.shape_cast %20 : vector<2x128xf32> to vector<1x2x128xf32>
      tpu.vector_store %arg5[%c0_12, %c0_13, %c0_14], %23 {strides = array<i32>} : memref<1x2x128xf32, #tpu.memory_space<vmem>>, vector<1x2x128xf32>,
    } else {
    }
    return
  }
  func.func @transform_0(%arg0: i32, %arg1: i32, %arg2: i32) -> (i32, i32, i32) {
    %c1_i32 = arith.constant 1 : i32
    %0 = arith.muli %arg0, %c1_i32 : i32
    %1 = arith.addi %0, %arg2 : i32
    %c0_i32 = arith.constant 0 : i32
    %c0_i32_0 = arith.constant 0 : i32
    return %arg1, %1, %c0_i32 : i32, i32, i32
  }
  func.func @transform_1(%arg0: i32, %arg1: i32, %arg2: i32) -> (i32, i32) {
    %c0_i32 = arith.constant 0 : i32
    %c0_i32_0 = arith.constant 0 : i32
    %c0_i32_1 = arith.constant 0 : i32
    return %c0_i32, %c0_i32_0 : i32, i32
  }
  func.func @transform_2(%arg0: i32, %arg1: i32, %arg2: i32) -> (i32, i32, i32) {
    %c0_i32 = arith.constant 0 : i32
    %c0_i32_0 = arith.constant 0 : i32
    return %arg0, %arg1, %c0_i32 : i32, i32, i32
  }
}

</mosaic_0001>

<bundles_post_ra>
// kernel: tpu_custom_call.1
= control target key start
LH: loop header
LB: loop body
LE: loop exit
PB: predicated region body
PF: predicated region fallthrough
CT: control target
= control target key end

     0   :  { %7 = vsyncpa [#allocation4], 0  ;;  %s953_s0 = inlined_call_operand.hbm [shape: f32[2,256,128], index: 0, kind: input, shape index: {}]   ;;  %s954_s1 = inlined_call_operand.hbm [shape: f32[256,128], index: 1, kind: input, shape index: {}]   ;;  %s955_s2 = inlined_call_operand.hbm [shape: f32[2,2,128], index: 2, kind: output, shape index: {}]  }
   0x1   :  { %9 = vsyncpa [#allocation4 + $0x1], 0 }
   0x2   :  { %10 = vsyncpa [#allocation7], 0 }
   0x3   :  { %11 = vsyncpa [#allocation5], 0 }
   0x4   :  { %13 = vsyncpa [#allocation5 + $0x1], 0  ;;  %s733_s9 = smov 0   ;;  %s735_s10 = smov 0  }
   0x5   :  { %s737_s11 = smov 0   ;;  %s739_s12 = smov 0  }
   0x6   :  { %s741_s13 = smov 0   ;;  %s743_s14 = smov 0  }
   0x7 LB: > { %s491_s15 = sadd.s32 4294967295, %s705_s14   ;;  %s492_s16 = sadd.s32 4294967294, %s705_s14   ;;  %s705_s14 = sphi %s743_s14, %s19_s14   ;;  %s701_s13 = sphi %s741_s13, %s971_s13   ;;  %s697_s12 = sphi %s739_s12, %s970_s12   ;;  %s693_s11 = sphi %s737_s11, %s969_s11   ;;  %s689_s10 = sphi %s735_s10, %s968_s10   ;;  %s685_s9 = sphi %s733_s9, %s967_s9  }
   0x8   : > { %s38_s17 = sadd.s32 1, %s701_s13  ;;  %s49_s18 = sadd.s32 1, %s693_s11 }
   0x9   : > { %p40_p0 = scmp.ge.s32.totalorder %s38_s17, 2  ;;  %p56_p1 = scmp.ne.s32.totalorder %s693_s11, %s689_s10 }
   0xa   : > { %p57_p2 = scmp.eq.s32.totalorder %s705_s14, 0  ;;  %p62_p3 = scmp.ne.s32.totalorder %s689_s10, %s685_s9 }
   0xb   : > { %s973_s17 = smov (%p40_p0, %s38_s17), 0  ;;  %p778_p5 = scmp.eq.s32.totalorder %s491_s15, 0 }
   0xc   : > { %p774_p4 = por %p57_p2, %p56_p1  ;;  %s45_s21 = ssub.s32 %s701_s13, %s973_s17 }
   0xd   : > { %p109_p6 = scmp.eq.s32.totalorder %s491_s15, 1  ;;  %p47_p7 = scmp.eq.s32.totalorder %s45_s21, 0 }
   0xe   : > { %p786_p8 = por %p778_p5, %p62_p3  ;;  %p115_p10 = scmp.eq.s32.totalorder %s492_s16, 1 }
   0xf   : > { %p790_p9 = por %p109_p6, %p56_p1  ;;  %p493_p12 = scmp.ge.s32.totalorder %s705_s14, 1 }
  0x10   : > { %s960_s22 = scalar_select %p786_p8, 1, 0 }
  0x11   : > { %s961_s23 = scalar_select %p790_p9, 1, 0 }
  0x12   : > { %s795_s24 = scalar_select %p47_p7, %s693_s11, %s49_s18  }
  0x13   : > { %p797_p11 = por %p115_p10, %p62_p3  ;;  %p122_p13 = scmp.lt.s32.totalorder %s705_s14, 3 }
  0x14   : > { %s707_s27 = smov [#allocation6]  }
  0x15   : > { %s962_s25 = scalar_select %p797_p11, 1, 0 }
  0x16   : > { %p803_p0 = pnand %p493_p12, %p122_p13  ;;  %s134_s28 = sshll.u32 %s707_s27, 4  ;;  %s135_s28 = int_to_ptr.vmem [resolvable:$true] %s134_s28 }
  0x17   : > { %s606_s29 = scalar_lea.vmem %s135_s28, 4096  ;;  %p614_p11 = scmp.lt.s32.totalorder %s135_s28, %s135_s28 }
  0x18   : > { %p526_p1 = pneg %p803_p0  ;;  %p607_p3 = scmp.ne.s32.totalorder %s135_s28, %s606_s29 }
  0x19   : > { %p615_p9 = scmp.lt.s32.totalorder %s606_s29, %s606_s29 }
  0x1a   : > { %p527_p2 = pnand %p526_p1, %p778_p5 }
  0x1b   : > { %p616_p8 = por %p615_p9, %p614_p11 }
  0x1c   : > { %p597_p6 = pneg %p527_p2 }
  0x1e   : > { %p609_p7 = pnand %p607_p3, %p597_p6 }
  0x20   : > { %p610_p10 = pneg %p609_p7 }
  0x22   : > { %p617_p12 = pnand %p616_p8, %p610_p10 }
  0x24   : > { %620 = shalt.err (!%p617_p12)
}
  0x25   : > { %s708_s30 = smov 128   ;;  %s709_s3 = smov 8  }
  0x26   : > { %529 = dma.hbm_to_vmem [thread:$0]  (!%p527_p2), %s954_s1, 4096, %s135_s28, [#allocation7], %s708_s30, %s708_s30, %s709_s3  }
  0x27   : > { %p495_p13 = scmp.ge.s32.totalorder %s705_s14, 2 }
  0x29   : > { %144 = sbr.rel (%p495_p13) target bundleno = 59 (0x3b), region = 20 }
  0x2e   : > { %s148_s6 = sand.u32 1, %s693_s11   ;;  %s510_s7 = sshll.u32 %s701_s13, 11 }
  0x2f   : > { %s496_s8 = sshll.u32 %s148_s6, 8  ;;  %s162_s18 = scalar_lea.hbm %s953_s0, %s510_s7 }
  0x30   : > { %s513_s21 = scalar_select %p774_p4, [#allocation0], [#allocation11] }
  0x31   : > { %s152_s27 = scalar_lea.vmem [#allocation3], %s496_s8  ;;  %s710_s30 = smov 4096  }
  0x32   : > { %s175_s28 = sshll.u32 %s152_s27, 4  ;;  %s167_s29 = sld [smem:[%s513_s21]]   ;;  %s176_s28 = int_to_ptr.vmem [resolvable:$true] %s175_s28 }
  0x33   : > { %514 = sst [smem:[#allocation10]] (%p774_p4), %s710_s30  ;;  %s711_s3 = smov 2048  }
  0x34   : > { %515 = sst [smem:[#allocation10 + $0x1]] (%p774_p4), %s711_s3  ;;  %s712_s4 = smov 16  }
  0x35   : > { %516 = sst [smem:[#allocation10 + $0x2]] (%p774_p4), %s712_s4  ;;  %s713_s5 = smov 128  }
  0x36   : > { %517 = sst [smem:[#allocation10 + $0x3]] (%p774_p4), %s713_s5  ;;  %s714_s8 = smov 8  }
  0x37   : > { %518 = sst [smem:[#allocation10 + $0x4]] (%p774_p4), %s713_s5  ;;  %s149_s16 = scalar_lea.sflag [#allocation4], %s148_s6 }
  0x38   : > { %s499_s7 = sshll.u32 %s167_s29, 26  ;;  %519 = sst [smem:[#allocation10 + $0x5]] (%p774_p4), %s714_s8 }
  0x39   : > { %s500_s15 = sadd.s32 134217728, %s499_s7  ;;  %s715_s21 = smov 131072  }
  0x3a   : > { %520 = dma.general (%p774_p4), %s162_s18, 4096, %s176_s28, %s149_s16, %s715_s21, [#allocation10], %s500_s15, 0  }
  0x3b PF: > { %200 = sbr.rel (%p803_p0) target bundleno = 142 (0x8e), region = 28  ;;  %s841_s27 = sand.u32 (!%p803_p0), 1, %s689_s10  }
  0x3c   : > { %s502_s30 = sshll.u32 (!%p803_p0), %s841_s27, 8  ;;  %s203_s29 = scalar_lea.sflag (!%p803_p0), [#allocation4], %s841_s27 }
  0x3d   : > { %s845_s3 = scalar_lea.vmem (!%p803_p0), [#allocation3], %s502_s30  ;;  %p964_p8 = scmp.ne.s32.totalorder (!%p803_p0), %s960_s22, 0 }
  0x40   : > { %672 = dma.done.wait (%p964_p8), %s203_s29, 4096  }
  0x41   : > { %674 = vsyncadd (%p964_p8), %s203_s29, 4294963200 }
  0x42   : > { %676 = dma.done.wait (%p778_p5), [#allocation7], 4096  }
  0x43   : > { %678 = vsyncadd (%p778_p5), [#allocation7], 4294963200  ;;  %v716_v0 = vmov 0.0   ;;  %s505_s19 = sshll.u32 %s697_s12, 7  ;;  %v258_v5 = vld [vmem:[%s845_s3] sm:$0xff]  ;;  %v259_v6 = vld [vmem:[%s845_s3 + $0x8] sm:$0xff] }
  0x44   : > { %238 = vst [vmem:[#allocation2] sm:$0x3] %v716_v0  ;;  %s856_s26 = scalar_lea.vmem [#allocation6], %s505_s19  ;;  %v260_v7 = vld [vmem:[%s845_s3 + $0x10] sm:$0xff]  ;;  %v261_v8 = vld [vmem:[%s845_s3 + $0x18] sm:$0xff]  ;;  %v262_v12 = vld [vmem:[%s845_s3 + $0x20] sm:$0xff] }
  0x45   : > { %v242_v1 = vld [vmem:[%s856_s26] sm:$0xff]  ;;  %v243_v2 = vld [vmem:[%s856_s26 + $0x8] sm:$0xff]  ;;  %v244_v3 = vld [vmem:[%s856_s26 + $0x10] sm:$0xff]  ;;  %vm367_vm0 = vcmask 1041409   ;;  %s504_s20 = sshll.u32 %s841_s27, 1  ;;  %s507_s18 = sshll.u32 %s697_s12, 5 }
  0x46   : > { %v245_v4 = vld [vmem:[%s856_s26 + $0x18] sm:$0xff]  ;;  %v290_v9 = vmul.f32 %v258_v5, %v242_v1  ;;  %v291_v10 = vmul.f32 %v259_v6, %v243_v2  ;;  %v246_v11 = vld [vmem:[%s856_s26 + $0x20] sm:$0xff]  ;;  %v292_v13 = vmul.f32 %v260_v7, %v244_v3  ;;  %v247_v16 = vld [vmem:[%s856_s26 + $0x28] sm:$0xff]  ;;  %s230_s22 = scalar_lea.vmem [#allocation8], %s504_s20  ;;  %s390_s5 = scalar_lea.hbm %s955_s2, %s507_s18 }
  0x47   : > { %v293_v14 = vmul.f32 %v261_v8, %v245_v4  ;;  %v263_v17 = vld [vmem:[%s845_s3 + $0x28] sm:$0xff]  ;;  %v274_v19 = vld [vmem:[%s845_s3 + $0x80] sm:$0xff]  ;;  %v294_v20 = vmul.f32 %v262_v12, %v246_v11  ;;  %v264_v22 = vld [vmem:[%s845_s3 + $0x30] sm:$0xff]  ;;  %s392_s6 = sshll.u32 %s230_s22, 4  ;;  %s378_s7 = scalar_lea.sflag [#allocation5], %s841_s27  ;;  %s908_s6 = int_to_ptr.vmem [resolvable:$true] %s392_s6 }
  0x48   : > { %v323_v15 = vadd.f32 %v291_v10, %v290_v9  ;;  %v248_v18 = vld [vmem:[%s856_s26 + $0x30] sm:$0xff]  ;;  %v306_v25 = vmul.f32 %v274_v19, %v242_v1  ;;  %v277_v26 = vld [vmem:[%s845_s3 + $0x98] sm:$0xff]  ;;  %v295_v27 = vmul.f32 %v263_v17, %v247_v16  ;;  %v278_v33 = vld [vmem:[%s845_s3 + $0xa0] sm:$0xff]  ;;  %s621_s8 = scalar_lea.vmem %s908_s6, 32  ;;  %p965_p5 = scmp.ne.s32.totalorder %s961_s23, 0 }
  0x49   : > { %v275_v23 = vld [vmem:[%s845_s3 + $0x88] sm:$0xff]  ;;  %v276_v24 = vld [vmem:[%s845_s3 + $0x90] sm:$0xff]  ;;  %v265_v31 = vld [vmem:[%s845_s3 + $0x38] sm:$0xff]  ;;  %v296_v34 = vmul.f32 %v264_v22, %v248_v18  ;;  %v309_v38 = vmul.f32 %v277_v26, %v245_v4  ;;  %v310_v45 = vmul.f32 %v278_v33, %v246_v11  ;;  %p622_p4 = scmp.ne.s32.totalorder %s908_s6, %s621_s8  ;;  %s717_s15 = smov [#allocation8]  }
  0x4a   : > { %v324_v21 = vadd.f32 %v323_v15, %v292_v13  ;;  %v307_v28 = vmul.f32 %v275_v23, %v243_v2  ;;  %v249_v30 = vld [vmem:[%s856_s26 + $0x38] sm:$0xff]  ;;  %v308_v32 = vmul.f32 %v276_v24, %v244_v3  ;;  %v250_v36 = vld [vmem:[%s856_s26 + $0x40] sm:$0xff]  ;;  %v279_v40 = vld [vmem:[%s845_s3 + $0xa8] sm:$0xff]  ;;  %s625_s16 = sshll.u32 %s717_s15, 4  ;;  %s626_s16 = int_to_ptr.vmem [resolvable:$false] %s625_s16 }
  0x4b   : > { %v266_v37 = vld [vmem:[%s845_s3 + $0x40] sm:$0xff]  ;;  %v297_v41 = vmul.f32 %v265_v31, %v249_v30  ;;  %v267_v44 = vld [vmem:[%s845_s3 + $0x48] sm:$0xff]  ;;  %v280_v47 = vld [vmem:[%s845_s3 + $0xb0] sm:$0xff]  ;;  %v311_v52 = vmul.f32 %v279_v40, %v247_v16  ;;  %p623_p9 = pnand %p622_p4, %p965_p5  ;;  %s627_s12 = scalar_lea.vmem %s626_s16, 64 }
  0x4c   : > { %v325_v29 = vadd.f32 %v324_v21, %v293_v14  ;;  %v344_v39 = vadd.f32 %v307_v28, %v306_v25  ;;  %v251_v43 = vld [vmem:[%s856_s26 + $0x48] sm:$0xff]  ;;  %v298_v48 = vmul.f32 %v266_v37, %v250_v36  ;;  %v252_v50 = vld [vmem:[%s856_s26 + $0x50] sm:$0xff]  ;;  %v281_v54 = vld [vmem:[%s845_s3 + $0xb8] sm:$0xff]  ;;  %v312_v59 = vmul.f32 %v280_v47, %v248_v18  ;;  %p628_p0 = scmp.lt.s32.totalorder %s908_s6, %s626_s16  ;;  %p629_p1 = scmp.lt.s32.totalorder %s627_s12, %s621_s8 }
  0x4d   : > { %v268_v51 = vld [vmem:[%s845_s3 + $0x50] sm:$0xff]  ;;  %v299_v55 = vmul.f32 %v267_v44, %v251_v43  ;;  %v269_v58 = vld [vmem:[%s845_s3 + $0x58] sm:$0xff]  ;;  %v282_v61 = vld [vmem:[%s845_s3 + $0xc0] sm:$0xff]  ;;  %v313_v2 = vmul.f32 %v281_v54, %v249_v30  ;;  %p624_p11 = pneg %p623_p9 }
  0x4e   : > { %v326_v35 = vadd.f32 %v325_v29, %v294_v20  ;;  %v345_v46 = vadd.f32 %v344_v39, %v308_v32  ;;  %v253_v57 = vld [vmem:[%s856_s26 + $0x58] sm:$0xff]  ;;  %v300_v62 = vmul.f32 %v268_v51, %v252_v50  ;;  %v254_v0 = vld [vmem:[%s856_s26 + $0x60] sm:$0xff]  ;;  %v283_v4 = vld [vmem:[%s845_s3 + $0xc8] sm:$0xff]  ;;  %v314_v9 = vmul.f32 %v282_v61, %v250_v36  ;;  %p630_p2 = por %p629_p1, %p628_p0 }
  0x4f   : > { %v270_v1 = vld [vmem:[%s845_s3 + $0x60] sm:$0xff]  ;;  %v301_v5 = vmul.f32 %v269_v58, %v253_v57  ;;  %v271_v8 = vld [vmem:[%s845_s3 + $0x68] sm:$0xff]  ;;  %v284_v11 = vld [vmem:[%s845_s3 + $0xd0] sm:$0xff]  ;;  %v315_v16 = vmul.f32 %v283_v4, %v251_v43 }
  0x50   : > { %v327_v42 = vadd.f32 %v326_v35, %v295_v27  ;;  %v346_v53 = vadd.f32 %v345_v46, %v309_v38  ;;  %v255_v7 = vld [vmem:[%s856_s26 + $0x68] sm:$0xff]  ;;  %v302_v12 = vmul.f32 %v270_v1, %v254_v0  ;;  %v256_v14 = vld [vmem:[%s856_s26 + $0x70] sm:$0xff]  ;;  %v285_v18 = vld [vmem:[%s845_s3 + $0xd8] sm:$0xff]  ;;  %v316_v23 = vmul.f32 %v284_v11, %v252_v50  ;;  %p631_p6 = pnand %p630_p2, %p624_p11 }
  0x51   : > { %v272_v15 = vld [vmem:[%s845_s3 + $0x70] sm:$0xff]  ;;  %v303_v19 = vmul.f32 %v271_v8, %v255_v7  ;;  %v273_v22 = vld [vmem:[%s845_s3 + $0x78] sm:$0xff]  ;;  %v286_v25 = vld [vmem:[%s845_s3 + $0xe0] sm:$0xff]  ;;  %v317_v28 = vmul.f32 %v285_v18, %v253_v57 }
  0x52   : > { %v328_v49 = vadd.f32 %v327_v42, %v296_v34  ;;  %v347_v60 = vadd.f32 %v346_v53, %v310_v45  ;;  %v257_v21 = vld [vmem:[%s856_s26 + $0x78] sm:$0xff]  ;;  %v304_v26 = vmul.f32 %v272_v15, %v256_v14  ;;  %v287_v30 = vld [vmem:[%s845_s3 + $0xe8] sm:$0xff]  ;;  %v318_v33 = vmul.f32 %v286_v25, %v254_v0  ;;  %v322_v58 = vld [vmem:[#allocation2] sm:$0x3] }
  0x53   : > { %v305_v31 = vmul.f32 %v273_v22, %v257_v21  ;;  %v288_v35 = vld [vmem:[%s845_s3 + $0xf0] sm:$0xff]  ;;  %v319_v37 = vmul.f32 %v287_v30, %v255_v7  ;;  %v289_v39 = vld [vmem:[%s845_s3 + $0xf8] sm:$0xff] }
  0x54   : > { %v329_v56 = vadd.f32 %v328_v49, %v297_v41  ;;  %v348_v3 = vadd.f32 %v347_v60, %v311_v52  ;;  %v320_v41 = vmul.f32 %v288_v35, %v256_v14  ;;  %v321_v44 = vmul.f32 %v289_v39, %v257_v21 }
  0x56   : > { %v330_v63 = vadd.f32 %v329_v56, %v298_v48  ;;  %v349_v10 = vadd.f32 %v348_v3, %v312_v59 }
  0x58   : > { %v331_v6 = vadd.f32 %v330_v63, %v299_v55  ;;  %v350_v17 = vadd.f32 %v349_v10, %v313_v2 }
  0x5a   : > { %v332_v13 = vadd.f32 %v331_v6, %v300_v62  ;;  %v351_v24 = vadd.f32 %v350_v17, %v314_v9 }
  0x5c   : > { %v333_v20 = vadd.f32 %v332_v13, %v301_v5  ;;  %v352_v29 = vadd.f32 %v351_v24, %v315_v16 }
  0x5e   : > { %v334_v27 = vadd.f32 %v333_v20, %v302_v12  ;;  %v353_v34 = vadd.f32 %v352_v29, %v316_v23 }
  0x60   : > { %v335_v32 = vadd.f32 %v334_v27, %v303_v19  ;;  %v354_v38 = vadd.f32 %v353_v34, %v317_v28 }
  0x62   : > { %v336_v36 = vadd.f32 %v335_v32, %v304_v26  ;;  %v355_v42 = vadd.f32 %v354_v38, %v318_v33 }
  0x64   : > { %v337_v40 = vadd.f32 %v336_v36, %v305_v31  ;;  %v356_v45 = vadd.f32 %v355_v42, %v319_v37 }
  0x66   : > { %v338_v43 = vrot.slane %v337_v40, 4  ;;  %v357_v47 = vadd.f32 %v356_v45, %v320_v41 }
  0x68   : > { %v339_v46 = vadd.f32 %v338_v43, %v337_v40  ;;  %v358_v49 = vadd.f32 %v357_v47, %v321_v44 }
  0x6a   : > { %v340_v48 = vrot.slane %v339_v46, 2  ;;  %v359_v51 = vrot.slane %v358_v49, 4 }
  0x6c   : > { %v341_v50 = vadd.f32 %v340_v48, %v339_v46  ;;  %v360_v52 = vadd.f32 %v359_v51, %v358_v49 }
  0x6e   : > { %v342_v53 = vrot.slane %v341_v50, 1  ;;  %v361_v54 = vrot.slane %v360_v52, 2 }
  0x70   : > { %v362_v55 = vadd.f32 %v361_v54, %v360_v52  ;;  %v343_v56 = vadd.f32 %v342_v53, %v341_v50 }
  0x72   : > { %v363_v57 = vrot.slane %v362_v55, 1 }
  0x74   : > { %v364_v59 = vadd.f32 %v363_v57, %v362_v55 }
  0x76   : > { %v368_v60 = vsel %vm367_vm0, %v364_v59, %v343_v56 }
  0x77   : > { %v370_v61 = vadd.f32 %v368_v60, %v322_v58 }
  0x79   : > { %371 = vst [vmem:[#allocation2] sm:$0x3] %v370_v61 }
  0x80   : > { %v375_v62 = vld [vmem:[#allocation2] sm:$0x3] }
  0x81   : > { %376 = vst [vmem:[%s230_s22] sm:$0x3] %v375_v62 }
  0x82   : > { %634 = shalt.err (!%p631_p6)
}
  0x83   : > { %s635_s21 = scalar_lea.hbm %s390_s5, 32  ;;  %s639_s29 = scalar_lea.hbm %s955_s2, 64 }
  0x84   : > { %p636_p3 = scmp.ne.s32.totalorder %s390_s5, %s635_s21  ;;  %p640_p12 = scmp.lt.s32.totalorder %s390_s5, %s955_s2 }
  0x85   : > { %p641_p8 = scmp.lt.s32.totalorder %s639_s29, %s635_s21 }
  0x86   : > { %p637_p7 = pnand %p636_p3, %p965_p5 }
  0x87   : > { %p642_p4 = por %p641_p8, %p640_p12 }
  0x88   : > { %p638_p10 = pneg %p637_p7 }
  0x8a   : > { %p643_p9 = pnand %p642_p4, %p638_p10 }
  0x8c   : > { %646 = shalt.err (!%p643_p9)
}
  0x8d   : > { %524 = dma.vmem_to_hbm [thread:$0]  (%p965_p5), %s908_s6, 32, %s390_s5, %s378_s7  }
  0x8e PF: > { %s404_s26 = sand.u32 1, %s685_s9   ;;  %p966_p11 = scmp.ne.s32.totalorder %s962_s25, 0 }
  0x8f   : > { %s405_s20 = scalar_lea.sflag [#allocation5], %s404_s26 }
  0x90   : > { %p531_p0 = pnand %p495_p13, %p966_p11 }
  0x92   : > { %p532_p1 = pneg %p531_p0 }
  0x94   : > { %680 = dma.done.wait (%p532_p1), %s405_s20, 32  }
  0x95   : > { %682 = vsyncadd (%p532_p1), %s405_s20, 4294967264  ;;  %s19_s14 = sadd.s32 1, %s705_s14   ;;  %s967_s9 = smov %s689_s10 }
  0x96   : > { %p16_p2 = scmp.ge.s32.totalorder %s19_s14, 4   ;;  %s968_s10 = smov %s693_s11 }
  0x97   : > { %s969_s11 = smov %s795_s24  ;;  %s970_s12 = smov %s701_s13 }
  0x98   : > { %s971_s13 = smov %s973_s17  ;;  %18 = sbr.rel (!%p16_p2) target bundleno = 7 (0x7), region = 91 }
  0x9d   :  { %410 = vsyncpa [#allocation4], 1 }
  0x9e   :  { %412 = vsyncpa [#allocation4 + $0x1], 1 }
  0x9f   :  { %413 = vsyncpa [#allocation7], 1 }
  0xa0   :  { %414 = vsyncpa [#allocation5], 1 }
  0xa1   :  { %416 = vsyncpa [#allocation5 + $0x1], 1 }

</bundles_post_ra>
